<compile_context>
chip_gen: v7x
topology: tpu7x:2x2x1
jax: 0.10.0
libtpu: 0.0.40
codegen_flags: <defaults>
</compile_context>

<pallas_src>
import functools

import jax
import jax.numpy as jnp
from jax.experimental import pallas as pl
from jax.experimental.pallas import tpu as pltpu


def _round_up(x, m):
    return (x + m - 1) // m * m


# ---------------------------------------------------------------------------
# Pallas kernels
# ---------------------------------------------------------------------------

def _make_stats_kernel():
    def kernel(pc_ref, wc_ref, sum_ref, sq_ref, acc_s, acc_q):
        t = pl.program_id(1)

        @pl.when(t == 0)
        def _():
            acc_s[...] = jnp.zeros_like(acc_s)
            acc_q[...] = jnp.zeros_like(acc_q)

        conv = jnp.dot(wc_ref[...], pc_ref[0, 0],            # [C, ps2*tn] f32
                       preferred_element_type=jnp.float32)
        acc_s[...] += conv
        acc_q[...] += conv * conv

        # Lane-reduce once at the last time step (XLU slot, essentially free)
        # so pass-1 HBM writeback is [nt, C, 1] instead of 2 x [C, Npix].
        @pl.when(t == pl.num_programs(1) - 1)
        def _():
            sum_ref[0] = jnp.sum(acc_s[...], axis=-1, keepdims=True)
            sq_ref[0] = jnp.sum(acc_q[...], axis=-1, keepdims=True)
    return kernel


def conv_bn_stats(pall, wc_pad, kc_pad, tn):
    """pall [T, nt, Ktot, ps2*tn] bf16 (conv rows first) -> sum/sq [nt, C, 1]."""
    T, nt, _, n2 = pall.shape
    C = wc_pad.shape[0]
    return pl.pallas_call(
        _make_stats_kernel(),
        out_shape=(jax.ShapeDtypeStruct((nt, C, 1), jnp.float32),
                   jax.ShapeDtypeStruct((nt, C, 1), jnp.float32)),
        grid_spec=pltpu.PrefetchScalarGridSpec(
            num_scalar_prefetch=0,
            grid=(nt, T),
            in_specs=[
                # only the conv rows [0, kc_pad) of the fused patch array
                pl.BlockSpec((1, 1, kc_pad, n2), lambda n, t: (t, n, 0, 0)),
                pl.BlockSpec((C, kc_pad), lambda n, t: (0, 0)),
            ],
            out_specs=(
                pl.BlockSpec((1, C, 1), lambda n, t: (n, 0, 0)),
                pl.BlockSpec((1, C, 1), lambda n, t: (n, 0, 0)),
            ),
            scratch_shapes=[pltpu.VMEM((C, n2), jnp.float32),
                            pltpu.VMEM((C, n2), jnp.float32)],
        ),
        compiler_params=pltpu.CompilerParams(
            dimension_semantics=("parallel", "arbitrary")),
    )(pall, wc_pad)


def _make_main_kernel(ps2, C, tn, inv_tau):
    def kernel(pall_ref, w_ref, bias_ref, o_ref, v_ref):
        # Membrane carry relies on grid=(nt, T) with T innermost ("arbitrary")
        # so each pixel tile sees its full time range on one TensorCore.
        @pl.when(pl.program_id(1) == 0)
        def _():
            v_ref[...] = jnp.zeros_like(v_ref)

        # ONE fused GEMM: conv (BN scale folded into weights) + jump branch,
        # all ps2 pool-window positions batched on the lane axis.
        h_all = jnp.dot(w_ref[...], pall_ref[0, 0],           # [C, ps2*tn] f32
                        preferred_element_type=jnp.float32)
        bias = jnp.broadcast_to(bias_ref[...], (C, tn))       # hoisted once

        pooled = None
        for p in range(ps2):                                  # static, lane-aligned slices
            h = h_all[:, p * tn:(p + 1) * tn] + bias          # BN shift + jump bias
            v = v_ref[p] + (h - v_ref[p]) * inv_tau           # LIF charge
            spike = v >= 1.0
            v_ref[p] = jnp.where(spike, 0.0, v)               # hard reset to 0
            pooled = spike if pooled is None else jnp.logical_or(pooled, spike)
        o_ref[0] = pooled.astype(o_ref.dtype)                 # 2x2 maxpool of 0/1 = OR
    return kernel


def fused_conv_bn_jump_lif_pool(pall, w_fused, bias, tau, tn):
    """pall [T, nt, Ktot, ps2*tn] -> pooled spikes [T, C, nt*tn] bf16."""
    T, nt, Ktot, n2 = pall.shape
    C = w_fused.shape[0]
    ps2 = n2 // tn
    Npix = nt * tn
    return pl.pallas_call(
        _make_main_kernel(ps2, C, tn, 1.0 / float(tau)),
        out_shape=jax.ShapeDtypeStruct((T, C, Npix), jnp.bfloat16),
        grid_spec=pltpu.PrefetchScalarGridSpec(
            num_scalar_prefetch=0,
            grid=(nt, T),
            in_specs=[
                pl.BlockSpec((1, 1, Ktot, n2), lambda n, t: (t, n, 0, 0)),
                pl.BlockSpec((C, Ktot), lambda n, t: (0, 0)),
                pl.BlockSpec((C, 1), lambda n, t: (0, 0)),
            ],
            out_specs=pl.BlockSpec((1, C, tn), lambda n, t: (t, 0, n)),
            scratch_shapes=[pltpu.VMEM((ps2, C, tn), jnp.float32)],
        ),
        compiler_params=pltpu.CompilerParams(
            dimension_semantics=("parallel", "arbitrary")),
    )(pall, w_fused, bias)


def _make_fc_kernel(T, B, inv_tau):
    def kernel(x_ref, w_ref, b_ref, o_ref):
        # One batched bf16 GEMM over all time steps, lane-dense (padded) labels.
        h = jnp.dot(x_ref[...], w_ref[...],
                    preferred_element_type=jnp.float32) + b_ref[...]
        v = jnp.zeros((B, h.shape[1]), jnp.float32)
        for t in range(T):                                    # tiny unrolled LIF scan
            ht = h[t * B:(t + 1) * B, :]
            v = v + (ht - v) * inv_tau
            spike = v >= 1.0
            o_ref[t * B:(t + 1) * B, :] = spike.astype(o_ref.dtype)
            v = jnp.where(spike, 0.0, v)
    return kernel


def fused_fc_lif(flat, w_pad, b_pad, T, B, tau):
    """flat [T*B, L] bf16, w_pad [L, Lp] bf16, b_pad [1, Lp] f32 -> [T*B, Lp]."""
    TB, L = flat.shape
    Lp = w_pad.shape[1]
    return pl.pallas_call(
        _make_fc_kernel(T, B, 1.0 / float(tau)),
        out_shape=jax.ShapeDtypeStruct((TB, Lp), jnp.float32),
        grid_spec=pltpu.PrefetchScalarGridSpec(
            num_scalar_prefetch=0,
            grid=(1,),
            in_specs=[
                pl.BlockSpec((TB, L), lambda i: (0, 0)),
                pl.BlockSpec((L, Lp), lambda i: (0, 0)),
                pl.BlockSpec((1, Lp), lambda i: (0, 0)),
            ],
            out_specs=pl.BlockSpec((TB, Lp), lambda i: (0, 0)),
        ),
        compiler_params=pltpu.CompilerParams(
            dimension_semantics=("arbitrary",)),
    )(flat, w_pad, b_pad)


# ---------------------------------------------------------------------------
# JAX glue: pool-grouped im2col, parameter setup, forward
# ---------------------------------------------------------------------------

def pool_grouped_patches(x, kh, kw, stride, pad, ps):
    """x: [T, B, C, H, W] -> patches [T, C*kh*kw, ps*ps, B*Ho*Wo].

    Pool-window position is a separate axis; (B, Ho, Wo) sit on the lane axis so
    the kernels stay lane-dense and transpose-free.  Feature index
    = c*kh*kw + i*kw + j, matching torch Conv2d weight.reshape(Cout, -1).
    """
    T, B, C, H, W = x.shape
    xp = jnp.pad(x, ((0, 0), (0, 0), (0, 0), (pad, pad), (pad, pad)))
    Hc = (H + 2 * pad - kh) // stride + 1
    Wc = (W + 2 * pad - kw) // stride + 1
    cols = []
    for i in range(kh):
        for j in range(kw):
            cols.append(xp[:, :, :, i:i + stride * Hc:stride, j:j + stride * Wc:stride])
    p = jnp.stack(cols, axis=3)                          # [T, B, C, kh*kw, Hc, Wc]
    p = p.reshape(T, B, C * kh * kw, Hc, Wc)
    Ho, Wo = Hc // ps, Wc // ps
    p = p.reshape(T, B, C * kh * kw, Ho, ps, Wo, ps)
    p = p.transpose(0, 2, 4, 6, 1, 3, 5)                 # [T, K, ph, pw, B, Ho, Wo]
    p = p.reshape(T, C * kh * kw, ps * ps, B * Ho * Wo)
    return p, Hc, Wc


def make_params(key, cfg):
    Cin, Cout = cfg["in_channels"], cfg["out_channels"]
    k = cfg["conv_k"]
    Cd, kh, kw = cfg["jump_cin"], cfg["jump_kh"], cfg["jump_kw"]
    label, fc_in = cfg["label_size"], cfg["fc_in"]

    ks = jax.random.split(key, 5)
    b_conv = 1.0 / jnp.sqrt(Cin * k * k)
    b_jump = 1.0 / jnp.sqrt(Cd * kh * kw)
    stdv = 0.5 / jnp.sqrt(fc_in)  # set_t_layer_parameters(lc_ampl=0.5)

    # conv bias omitted on purpose: exactly cancelled by training-mode BatchNorm.
    return {
        "conv_w": jax.random.uniform(ks[0], (Cout, Cin, k, k), jnp.float32, -b_conv, b_conv),
        "jump_w": jax.random.uniform(ks[1], (Cout, Cd, kh, kw), jnp.float32, -b_jump, b_jump),
        "jump_b": jax.random.uniform(ks[2], (Cout,), jnp.float32, -b_jump, b_jump),
        "bn_gamma": jnp.ones((Cout,), jnp.float32),
        "bn_beta": jnp.zeros((Cout,), jnp.float32),
        "fc_w": jax.random.uniform(ks[3], (label, fc_in), jnp.float32, -stdv, stdv),
        "fc_b": jax.random.uniform(ks[4], (label,), jnp.float32, -stdv, stdv),
    }


def connected_conv2d_block_forward(X, inp, params, cfg):
    T, B, Cin, H, W = X.shape
    Cout = cfg["out_channels"]
    k, s, p = cfg["conv_k"], cfg["conv_s"], cfg["conv_p"]
    ps = cfg["pool_k"]   # pool_kernel == pool_stride, pool_padding == 0
    tau = cfg["tau"]
    kh, kw = cfg["jump_kh"], cfg["jump_kw"]
    label = cfg["label_size"]
    ps2 = ps * ps

    # ---- pool-grouped im2col patches (bf16 halves HBM traffic into the MXU) --
    pc, Hc, Wc = pool_grouped_patches(X, k, k, s, p, ps)        # [T, Kc, ps2, Npix]
    pj, Hj, Wj = pool_grouped_patches(inp, kh, kw, 1, 0, ps)    # [T, Kj, ps2, Npix]
    assert (Hj, Wj) == (Hc, Wc) and Hc % ps == 0 and Wc % ps == 0
    Hout, Wout = Hc // ps, Wc // ps
    Npix = B * Hout * Wout
    Kc, Kj = pc.shape[1], pj.shape[1]
    Kc_pad, Kj_pad = _round_up(Kc, 8), _round_up(Kj, 8)
    Ktot = Kc_pad + Kj_pad

    # Lane tile tn: largest power-of-two dividing Npix that keeps nt >= 2 when
    # possible (v7x: 2 TensorCores) and the double-buffered bf16 input block
    # comfortably inside v7x's 64 MiB VMEM.  Toy size: Npix = 128 -> tn = 128.
    assert Npix % 128 == 0
    tn = 128
    while (Npix % (2 * tn) == 0 and Npix // (2 * tn) >= 2
           and 2 * Ktot * ps2 * (2 * tn) * 2 < (6 << 20)):
        tn *= 2
    nt = Npix // tn

    # Pad K to sublane multiples, concatenate conv+jump on K, tile the pixels.
    pall = jnp.concatenate([
        jnp.pad(pc, ((0, 0), (0, Kc_pad - Kc), (0, 0), (0, 0))),
        jnp.pad(pj, ((0, 0), (0, Kj_pad - Kj), (0, 0), (0, 0))),
    ], axis=1)                                                  # [T, Ktot, ps2, Npix]
    pall = (pall.reshape(T, Ktot, ps2, nt, tn)
                .transpose(0, 3, 1, 2, 4)
                .reshape(T, nt, Ktot, ps2 * tn)
                .astype(jnp.bfloat16))

    wc_flat = params["conv_w"].reshape(Cout, Kc)
    wj_flat = params["jump_w"].reshape(Cout, Kj)
    wc_stats = jnp.pad(wc_flat, ((0, 0), (0, Kc_pad - Kc))).astype(jnp.bfloat16)

    # ---- pass 1: BatchNorm2d batch statistics of the conv branch -------------
    s_sum, s_sq = conv_bn_stats(pall, wc_stats, Kc_pad, tn)     # 2 x [nt, C, 1]
    M1 = T * ps2 * Npix                                         # = T * B * Hc * Wc
    mean = jnp.sum(s_sum, axis=(0, 2)) / M1
    # single-pass var; clamp guards tiny negative values from E[x^2] - mean^2
    var = jnp.maximum(jnp.sum(s_sq, axis=(0, 2)) / M1 - mean * mean, 0.0)
    scale = params["bn_gamma"] / jnp.sqrt(var + 1e-5)
    shift = params["bn_beta"] - mean * scale

    # BN scale folded into the conv weights; conv+jump weights fused on K.
    w_fused = jnp.concatenate([
        jnp.pad(wc_flat * scale[:, None], ((0, 0), (0, Kc_pad - Kc))),
        jnp.pad(wj_flat, ((0, 0), (0, Kj_pad - Kj))),
    ], axis=1).astype(jnp.bfloat16)                             # [C, Ktot]
    bias = (shift + params["jump_b"]).reshape(Cout, 1)          # f32, added in-kernel

    # ---- pass 2: fused conv+jump GEMM + BN + LIF + 2x2 maxpool per time step -
    pooled = fused_conv_bn_jump_lif_pool(pall, w_fused, bias, tau, tn)  # [T,C,Npix] bf16

    # torch layout [T, B, C, Hout, Wout] -- required for the module's return
    # value anyway; done on bf16 spikes (exact 0/1) to halve the traffic.
    pooled_tbc = pooled.reshape(T, Cout, B, Hout, Wout).transpose(0, 2, 1, 3, 4)
    X_out = pooled_tbc.astype(jnp.float32)

    # ---- pass 3: fused t_fc + t_lif (target=True, plain LIFNode path) --------
    L = Cout * Hout * Wout                                      # Flatten(start_dim=2)
    Lp = _round_up(max(label, 128), 128)                        # lane-dense labels
    w_pad = jnp.zeros((L, Lp), jnp.float32).at[:, :label].set(params["fc_w"].T)
    b_pad = jnp.zeros((1, Lp), jnp.float32).at[0, :label].set(params["fc_b"])
    flat = pooled_tbc.reshape(T * B, L)                         # bf16 MXU input
    y = fused_fc_lif(flat, w_pad.astype(jnp.bfloat16), b_pad, T, B, tau)
    y_t = y.reshape(T, B, Lp)[:, :, :label]

    return X_out, y_t


# ---------------------------------------------------------------------------
# main
# ---------------------------------------------------------------------------

if __name__ == "__main__":
    # Module configuration (small, self-consistent with ConvBaseBlock math)
    T, B = 3, 2
    in_channels, out_channels = 4, 8
    H = W = 16                        # input_shape
    conv_k, conv_s, conv_p = 3, 1, 1  # -> conv output 16x16
    pool_k, pool_s, pool_p = 2, 2, 0  # -> block output 8x8
    data_shape = (2, 20, 20)          # jump kernel = (20-15, 20-15) = (5, 5)
    label_size = 10
    tau = 2.0

    Hc = (H + 2 * conv_p - conv_k) // conv_s + 1
    Wc = (W + 2 * conv_p - conv_k) // conv_s + 1
    Hout, Wout = (Hc - pool_k) // pool_s + 1, (Wc - pool_k) // pool_s + 1
    jump_kh = data_shape[1] - (Hc - 1)
    jump_kw = data_shape[2] - (Wc - 1)

    cfg = {
        "in_channels": in_channels, "out_channels": out_channels,
        "conv_k": conv_k, "conv_s": conv_s, "conv_p": conv_p,
        "pool_k": pool_k,
        "jump_cin": data_shape[0], "jump_kh": jump_kh, "jump_kw": jump_kw,
        "label_size": label_size, "fc_in": out_channels * Hout * Wout,
        "tau": tau,
    }

    key = jax.random.PRNGKey(0)
    k_par, k_x, k_in = jax.random.split(key, 3)
    params = make_params(k_par, cfg)

    X = jax.random.normal(k_x, (T, B, in_channels, H, W), jnp.float32)
    inp = jax.random.normal(k_in, (T, B, data_shape[0], data_shape[1], data_shape[2]),
                            jnp.float32)

    fwd = jax.jit(functools.partial(connected_conv2d_block_forward, cfg=cfg))
    X_out, y_t = fwd(X, inp, params)
    jax.block_until_ready((X_out, y_t))

    assert X_out.shape == (T, B, out_channels, Hout, Wout)
    assert y_t.shape == (T, B, label_size)
    print("KERNEL_OK")
</pallas_src>

<mosaic_0001>
module attributes {stable_mosaic.version = 11 : i64} {
  func.func @kernel(%arg0: i32, %arg1: i32, %arg2: memref<1x1x40x512xbf16, #tpu.memory_space<vmem>>, %arg3: memref<8x40xbf16, #tpu.memory_space<vmem>>, %arg4: memref<1x8x1xf32, #tpu.memory_space<vmem>>, %arg5: memref<1x8x1xf32, #tpu.memory_space<vmem>>, %arg6: memref<8x512xf32, #tpu.memory_space<vmem>>, %arg7: memref<8x512xf32, #tpu.memory_space<vmem>>) attributes {dimension_semantics = [#tpu.dimension_semantics<parallel>, #tpu.dimension_semantics<arbitrary>], iteration_bounds = array<i64: 1, 3>, scalar_prefetch = 0 : i64, scratch_operands = 2 : i64, tpu.core_type = #tpu.core_type<tc>, window_params = [{transform_indices = @transform_0, window_bounds = array<i64: 1, 1, 40, 512>}, {pipeline_mode = #tpu.pipeline_mode<synchronous>, transform_indices = @transform_1, window_bounds = array<i64: 8, 40>}, {transform_indices = @transform_2, window_bounds = array<i64: 1, 8, 1>}, {transform_indices = @transform_3, window_bounds = array<i64: 1, 8, 1>}]} {
    %c0_i32 = arith.constant 0 : i32
    %0 = arith.cmpi eq, %arg1, %c0_i32 : i32
    %1 = arith.extui %0 : i1 to i32
    %c0_i32_0 = arith.constant 0 : i32
    %2 = arith.cmpi ne, %1, %c0_i32_0 : i32
    scf.if %2 {
      %cst_15 = arith.constant 0.000000e+00 : f32
      %17 = vector.broadcast %cst_15 : f32 to vector<8x512xf32>
      %c0_16 = arith.constant 0 : index
      %c0_17 = arith.constant 0 : index
      %18 = vector.load %arg6[%c0_16, %c0_17] : memref<8x512xf32, #tpu.memory_space<vmem>>, vector<8x512xf32>
      tpu.vector_store %arg6[%c0_16, %c0_17], %17 {strides = array<i32>} : memref<8x512xf32, #tpu.memory_space<vmem>>, vector<8x512xf32>,
      %cst_18 = arith.constant 0.000000e+00 : f32
      %19 = vector.broadcast %cst_18 : f32 to vector<8x512xf32>
      %c0_19 = arith.constant 0 : index
      %c0_20 = arith.constant 0 : index
      %20 = vector.load %arg7[%c0_19, %c0_20] : memref<8x512xf32, #tpu.memory_space<vmem>>, vector<8x512xf32>
      tpu.vector_store %arg7[%c0_19, %c0_20], %19 {strides = array<i32>} : memref<8x512xf32, #tpu.memory_space<vmem>>, vector<8x512xf32>,
    } else {
    }
    %c0 = arith.constant 0 : index
    %c0_1 = arith.constant 0 : index
    %3 = vector.load %arg3[%c0, %c0_1] : memref<8x40xbf16, #tpu.memory_space<vmem>>, vector<8x40xbf16>
    %c0_2 = arith.constant 0 : index
    %c0_3 = arith.constant 0 : index
    %c0_4 = arith.constant 0 : index
    %c0_5 = arith.constant 0 : index
    %4 = vector.load %arg2[%c0_2, %c0_3, %c0_4, %c0_5] : memref<1x1x40x512xbf16, #tpu.memory_space<vmem>>, vector<1x1x40x512xbf16>
    %5 = vector.shape_cast %4 : vector<1x1x40x512xbf16> to vector<40x512xbf16>
    %cst = arith.constant dense<0.000000e+00> : vector<8x512xf32>
    %6 = tpu.matmul %3, %5, %cst {dimension_numbers = #tpu.dot_dimension_numbers<[1], [0], [0], [1], [0, 0, 1, 1], [], []>} : vector<8x40xbf16>, vector<40x512xbf16>, vector<8x512xf32> -> vector<8x512xf32>
    %c0_6 = arith.constant 0 : index
    %c0_7 = arith.constant 0 : index
    %7 = vector.load %arg6[%c0_6, %c0_7] : memref<8x512xf32, #tpu.memory_space<vmem>>, vector<8x512xf32>
    %8 = arith.addf %7, %6 : vector<8x512xf32>
    %c0_8 = arith.constant 0 : index
    %c0_9 = arith.constant 0 : index
    %9 = vector.load %arg6[%c0_8, %c0_9] : memref<8x512xf32, #tpu.memory_space<vmem>>, vector<8x512xf32>
    tpu.vector_store %arg6[%c0_8, %c0_9], %8 {strides = array<i32>} : memref<8x512xf32, #tpu.memory_space<vmem>>, vector<8x512xf32>,
    %c0_10 = arith.constant 0 : index
    %c0_11 = arith.constant 0 : index
    %10 = vector.load %arg7[%c0_10, %c0_11] : memref<8x512xf32, #tpu.memory_space<vmem>>, vector<8x512xf32>
    %11 = arith.mulf %6, %6 : vector<8x512xf32>
    %12 = arith.addf %10, %11 : vector<8x512xf32>
    %c0_12 = arith.constant 0 : index
    %c0_13 = arith.constant 0 : index
    %13 = vector.load %arg7[%c0_12, %c0_13] : memref<8x512xf32, #tpu.memory_space<vmem>>, vector<8x512xf32>
    tpu.vector_store %arg7[%c0_12, %c0_13], %12 {strides = array<i32>} : memref<8x512xf32, #tpu.memory_space<vmem>>, vector<8x512xf32>,
    %c2_i32 = arith.constant 2 : i32
    %14 = arith.cmpi eq, %arg1, %c2_i32 : i32
    %15 = arith.extui %14 : i1 to i32
    %c0_i32_14 = arith.constant 0 : i32
    %16 = arith.cmpi ne, %15, %c0_i32_14 : i32
    scf.if %16 {
      %c0_15 = arith.constant 0 : index
      %c0_16 = arith.constant 0 : index
      %17 = vector.load %arg6[%c0_15, %c0_16] : memref<8x512xf32, #tpu.memory_space<vmem>>, vector<8x512xf32>
      %cst_17 = arith.constant dense<0.000000e+00> : vector<8xf32>
      %18 = vector.multi_reduction <add>, %17, %cst_17 [1] : vector<8x512xf32> to vector<8xf32>
      %19 = vector.shape_cast %18 : vector<8xf32> to vector<8x1xf32>
      %c0_18 = arith.constant 0 : index
      %c0_19 = arith.constant 0 : index
      %c0_20 = arith.constant 0 : index
      %20 = vector.load %arg4[%c0_18, %c0_19, %c0_20] : memref<1x8x1xf32, #tpu.memory_space<vmem>>, vector<1x8x1xf32>
      %21 = vector.shape_cast %20 : vector<1x8x1xf32> to vector<8x1xf32>
      %22 = vector.shape_cast %19 : vector<8x1xf32> to vector<1x8x1xf32>
      tpu.vector_store %arg4[%c0_18, %c0_19, %c0_20], %22 {strides = array<i32>} : memref<1x8x1xf32, #tpu.memory_space<vmem>>, vector<1x8x1xf32>,
      %c0_21 = arith.constant 0 : index
      %c0_22 = arith.constant 0 : index
      %23 = vector.load %arg7[%c0_21, %c0_22] : memref<8x512xf32, #tpu.memory_space<vmem>>, vector<8x512xf32>
      %cst_23 = arith.constant dense<0.000000e+00> : vector<8xf32>
      %24 = vector.multi_reduction <add>, %23, %cst_23 [1] : vector<8x512xf32> to vector<8xf32>
      %25 = vector.shape_cast %24 : vector<8xf32> to vector<8x1xf32>
      %c0_24 = arith.constant 0 : index
      %c0_25 = arith.constant 0 : index
      %c0_26 = arith.constant 0 : index
      %26 = vector.load %arg5[%c0_24, %c0_25, %c0_26] : memref<1x8x1xf32, #tpu.memory_space<vmem>>, vector<1x8x1xf32>
      %27 = vector.shape_cast %26 : vector<1x8x1xf32> to vector<8x1xf32>
      %28 = vector.shape_cast %25 : vector<8x1xf32> to vector<1x8x1xf32>
      tpu.vector_store %arg5[%c0_24, %c0_25, %c0_26], %28 {strides = array<i32>} : memref<1x8x1xf32, #tpu.memory_space<vmem>>, vector<1x8x1xf32>,
    } else {
    }
    return
  }
  func.func @transform_0(%arg0: i32, %arg1: i32) -> (i32, i32, i32, i32) {
    %c0_i32 = arith.constant 0 : i32
    %c0_i32_0 = arith.constant 0 : i32
    %c0_i32_1 = arith.constant 0 : i32
    return %arg1, %arg0, %c0_i32, %c0_i32_0 : i32, i32, i32, i32
  }
  func.func @transform_1(%arg0: i32, %arg1: i32) -> (i32, i32) {
    %c0_i32 = arith.constant 0 : i32
    %c0_i32_0 = arith.constant 0 : i32
    %c0_i32_1 = arith.constant 0 : i32
    return %c0_i32, %c0_i32_0 : i32, i32
  }
  func.func @transform_2(%arg0: i32, %arg1: i32) -> (i32, i32, i32) {
    %c0_i32 = arith.constant 0 : i32
    %c0_i32_0 = arith.constant 0 : i32
    %c0_i32_1 = arith.constant 0 : i32
    return %arg0, %c0_i32, %c0_i32_0 : i32, i32, i32
  }
  func.func @transform_3(%arg0: i32, %arg1: i32) -> (i32, i32, i32) {
    %c0_i32 = arith.constant 0 : i32
    %c0_i32_0 = arith.constant 0 : i32
    %c0_i32_1 = arith.constant 0 : i32
    return %arg0, %c0_i32, %c0_i32_0 : i32, i32, i32
  }
}

module attributes {stable_mosaic.version = 11 : i64} {
  func.func @kernel(%arg0: i32, %arg1: i32, %arg2: memref<1x1x96x512xbf16, #tpu.memory_space<vmem>>, %arg3: memref<8x96xbf16, #tpu.memory_space<vmem>>, %arg4: memref<8x1xf32, #tpu.memory_space<vmem>>, %arg5: memref<1x8x128xbf16, #tpu.memory_space<vmem>>, %arg6: memref<4x8x128xf32, #tpu.memory_space<vmem>>) attributes {dimension_semantics = [#tpu.dimension_semantics<parallel>, #tpu.dimension_semantics<arbitrary>], iteration_bounds = array<i64: 1, 3>, scalar_prefetch = 0 : i64, scratch_operands = 1 : i64, tpu.core_type = #tpu.core_type<tc>, window_params = [{transform_indices = @transform_0, window_bounds = array<i64: 1, 1, 96, 512>}, {pipeline_mode = #tpu.pipeline_mode<synchronous>, transform_indices = @transform_1, window_bounds = array<i64: 8, 96>}, {pipeline_mode = #tpu.pipeline_mode<synchronous>, transform_indices = @transform_2, window_bounds = array<i64: 8, 1>}, {transform_indices = @transform_3, window_bounds = array<i64: 1, 8, 128>}]} {
    %c0_i32 = arith.constant 0 : i32
    %0 = arith.cmpi eq, %arg1, %c0_i32 : i32
    %1 = arith.extui %0 : i1 to i32
    %c0_i32_0 = arith.constant 0 : i32
    %2 = arith.cmpi ne, %1, %c0_i32_0 : i32
    scf.if %2 {
      %cst_56 = arith.constant 0.000000e+00 : f32
      %87 = vector.broadcast %cst_56 : f32 to vector<4x8x128xf32>
      %c0_57 = arith.constant 0 : index
      %c0_58 = arith.constant 0 : index
      %c0_59 = arith.constant 0 : index
      %88 = vector.load %arg6[%c0_57, %c0_58, %c0_59] : memref<4x8x128xf32, #tpu.memory_space<vmem>>, vector<4x8x128xf32>
      tpu.vector_store %arg6[%c0_57, %c0_58, %c0_59], %87 {strides = array<i32>} : memref<4x8x128xf32, #tpu.memory_space<vmem>>, vector<4x8x128xf32>,
    } else {
    }
    %c0 = arith.constant 0 : index
    %c0_1 = arith.constant 0 : index
    %3 = vector.load %arg3[%c0, %c0_1] : memref<8x96xbf16, #tpu.memory_space<vmem>>, vector<8x96xbf16>
    %c0_2 = arith.constant 0 : index
    %c0_3 = arith.constant 0 : index
    %c0_4 = arith.constant 0 : index
    %c0_5 = arith.constant 0 : index
    %4 = vector.load %arg2[%c0_2, %c0_3, %c0_4, %c0_5] : memref<1x1x96x512xbf16, #tpu.memory_space<vmem>>, vector<1x1x96x512xbf16>
    %5 = vector.shape_cast %4 : vector<1x1x96x512xbf16> to vector<96x512xbf16>
    %cst = arith.constant dense<0.000000e+00> : vector<8x512xf32>
    %6 = tpu.matmul %3, %5, %cst {dimension_numbers = #tpu.dot_dimension_numbers<[1], [0], [0], [1], [0, 0, 1, 1], [], []>} : vector<8x96xbf16>, vector<96x512xbf16>, vector<8x512xf32> -> vector<8x512xf32>
    %c0_6 = arith.constant 0 : index
    %c0_7 = arith.constant 0 : index
    %7 = vector.load %arg4[%c0_6, %c0_7] : memref<8x1xf32, #tpu.memory_space<vmem>>, vector<8x1xf32>
    %8 = vector.shape_cast %7 : vector<8x1xf32> to vector<8x1xf32>
    %9 = vector.broadcast %8 : vector<8x1xf32> to vector<8x128xf32>
    %10 = vector.extract_strided_slice %6 {offsets = [0, 0], sizes = [8, 128], strides = [1, 1]} : vector<8x512xf32> to vector<8x128xf32>
    %11 = arith.addf %10, %9 : vector<8x128xf32>
    %c0_8 = arith.constant 0 : index
    %c0_9 = arith.constant 0 : index
    %c0_10 = arith.constant 0 : index
    %12 = vector.load %arg6[%c0_8, %c0_9, %c0_10] : memref<4x8x128xf32, #tpu.memory_space<vmem>>, vector<1x8x128xf32>
    %13 = vector.shape_cast %12 : vector<1x8x128xf32> to vector<8x128xf32>
    %c0_11 = arith.constant 0 : index
    %c0_12 = arith.constant 0 : index
    %c0_13 = arith.constant 0 : index
    %14 = vector.load %arg6[%c0_11, %c0_12, %c0_13] : memref<4x8x128xf32, #tpu.memory_space<vmem>>, vector<1x8x128xf32>
    %15 = vector.shape_cast %14 : vector<1x8x128xf32> to vector<8x128xf32>
    %16 = arith.subf %11, %15 : vector<8x128xf32>
    %cst_14 = arith.constant 5.000000e-01 : f32
    %17 = vector.broadcast %cst_14 : f32 to vector<8x128xf32>
    %18 = arith.mulf %16, %17 : vector<8x128xf32>
    %19 = arith.addf %13, %18 : vector<8x128xf32>
    %cst_15 = arith.constant 1.000000e+00 : f32
    %20 = vector.broadcast %cst_15 : f32 to vector<8x128xf32>
    %21 = arith.cmpf oge, %19, %20 : vector<8x128xf32>
    %cst_16 = arith.constant 0.000000e+00 : f32
    %22 = vector.broadcast %cst_16 : f32 to vector<8x128xf32>
    %23 = arith.select %21, %22, %19 : vector<8x128xi1>, vector<8x128xf32>
    %c0_17 = arith.constant 0 : index
    %c0_18 = arith.constant 0 : index
    %c0_19 = arith.constant 0 : index
    %24 = vector.load %arg6[%c0_17, %c0_18, %c0_19] : memref<4x8x128xf32, #tpu.memory_space<vmem>>, vector<1x8x128xf32>
    %25 = vector.shape_cast %24 : vector<1x8x128xf32> to vector<8x128xf32>
    %26 = vector.shape_cast %23 : vector<8x128xf32> to vector<1x8x128xf32>
    tpu.vector_store %arg6[%c0_17, %c0_18, %c0_19], %26 {strides = array<i32>} : memref<4x8x128xf32, #tpu.memory_space<vmem>>, vector<1x8x128xf32>,
    %27 = vector.extract_strided_slice %6 {offsets = [0, 128], sizes = [8, 128], strides = [1, 1]} : vector<8x512xf32> to vector<8x128xf32>
    %28 = arith.addf %27, %9 : vector<8x128xf32>
    %c1 = arith.constant 1 : index
    %c0_20 = arith.constant 0 : index
    %c0_21 = arith.constant 0 : index
    %29 = vector.load %arg6[%c1, %c0_20, %c0_21] : memref<4x8x128xf32, #tpu.memory_space<vmem>>, vector<1x8x128xf32>
    %30 = vector.shape_cast %29 : vector<1x8x128xf32> to vector<8x128xf32>
    %c1_22 = arith.constant 1 : index
    %c0_23 = arith.constant 0 : index
    %c0_24 = arith.constant 0 : index
    %31 = vector.load %arg6[%c1_22, %c0_23, %c0_24] : memref<4x8x128xf32, #tpu.memory_space<vmem>>, vector<1x8x128xf32>
    %32 = vector.shape_cast %31 : vector<1x8x128xf32> to vector<8x128xf32>
    %33 = arith.subf %28, %32 : vector<8x128xf32>
    %cst_25 = arith.constant 5.000000e-01 : f32
    %34 = vector.broadcast %cst_25 : f32 to vector<8x128xf32>
    %35 = arith.mulf %33, %34 : vector<8x128xf32>
    %36 = arith.addf %30, %35 : vector<8x128xf32>
    %cst_26 = arith.constant 1.000000e+00 : f32
    %37 = vector.broadcast %cst_26 : f32 to vector<8x128xf32>
    %38 = arith.cmpf oge, %36, %37 : vector<8x128xf32>
    %cst_27 = arith.constant 0.000000e+00 : f32
    %39 = vector.broadcast %cst_27 : f32 to vector<8x128xf32>
    %40 = arith.select %38, %39, %36 : vector<8x128xi1>, vector<8x128xf32>
    %c1_28 = arith.constant 1 : index
    %c0_29 = arith.constant 0 : index
    %c0_30 = arith.constant 0 : index
    %41 = vector.load %arg6[%c1_28, %c0_29, %c0_30] : memref<4x8x128xf32, #tpu.memory_space<vmem>>, vector<1x8x128xf32>
    %42 = vector.shape_cast %41 : vector<1x8x128xf32> to vector<8x128xf32>
    %43 = vector.shape_cast %40 : vector<8x128xf32> to vector<1x8x128xf32>
    tpu.vector_store %arg6[%c1_28, %c0_29, %c0_30], %43 {strides = array<i32>} : memref<4x8x128xf32, #tpu.memory_space<vmem>>, vector<1x8x128xf32>,
    %44 = arith.ori %21, %38 : vector<8x128xi1>
    %45 = vector.extract_strided_slice %6 {offsets = [0, 256], sizes = [8, 128], strides = [1, 1]} : vector<8x512xf32> to vector<8x128xf32>
    %46 = arith.addf %45, %9 : vector<8x128xf32>
    %c2 = arith.constant 2 : index
    %c0_31 = arith.constant 0 : index
    %c0_32 = arith.constant 0 : index
    %47 = vector.load %arg6[%c2, %c0_31, %c0_32] : memref<4x8x128xf32, #tpu.memory_space<vmem>>, vector<1x8x128xf32>
    %48 = vector.shape_cast %47 : vector<1x8x128xf32> to vector<8x128xf32>
    %c2_33 = arith.constant 2 : index
    %c0_34 = arith.constant 0 : index
    %c0_35 = arith.constant 0 : index
    %49 = vector.load %arg6[%c2_33, %c0_34, %c0_35] : memref<4x8x128xf32, #tpu.memory_space<vmem>>, vector<1x8x128xf32>
    %50 = vector.shape_cast %49 : vector<1x8x128xf32> to vector<8x128xf32>
    %51 = arith.subf %46, %50 : vector<8x128xf32>
    %cst_36 = arith.constant 5.000000e-01 : f32
    %52 = vector.broadcast %cst_36 : f32 to vector<8x128xf32>
    %53 = arith.mulf %51, %52 : vector<8x128xf32>
    %54 = arith.addf %48, %53 : vector<8x128xf32>
    %cst_37 = arith.constant 1.000000e+00 : f32
    %55 = vector.broadcast %cst_37 : f32 to vector<8x128xf32>
    %56 = arith.cmpf oge, %54, %55 : vector<8x128xf32>
    %cst_38 = arith.constant 0.000000e+00 : f32
    %57 = vector.broadcast %cst_38 : f32 to vector<8x128xf32>
    %58 = arith.select %56, %57, %54 : vector<8x128xi1>, vector<8x128xf32>
    %c2_39 = arith.constant 2 : index
    %c0_40 = arith.constant 0 : index
    %c0_41 = arith.constant 0 : index
    %59 = vector.load %arg6[%c2_39, %c0_40, %c0_41] : memref<4x8x128xf32, #tpu.memory_space<vmem>>, vector<1x8x128xf32>
    %60 = vector.shape_cast %59 : vector<1x8x128xf32> to vector<8x128xf32>
    %61 = vector.shape_cast %58 : vector<8x128xf32> to vector<1x8x128xf32>
    tpu.vector_store %arg6[%c2_39, %c0_40, %c0_41], %61 {strides = array<i32>} : memref<4x8x128xf32, #tpu.memory_space<vmem>>, vector<1x8x128xf32>,
    %62 = arith.ori %44, %56 : vector<8x128xi1>
    %63 = vector.extract_strided_slice %6 {offsets = [0, 384], sizes = [8, 128], strides = [1, 1]} : vector<8x512xf32> to vector<8x128xf32>
    %64 = arith.addf %63, %9 : vector<8x128xf32>
    %c3 = arith.constant 3 : index
    %c0_42 = arith.constant 0 : index
    %c0_43 = arith.constant 0 : index
    %65 = vector.load %arg6[%c3, %c0_42, %c0_43] : memref<4x8x128xf32, #tpu.memory_space<vmem>>, vector<1x8x128xf32>
    %66 = vector.shape_cast %65 : vector<1x8x128xf32> to vector<8x128xf32>
    %c3_44 = arith.constant 3 : index
    %c0_45 = arith.constant 0 : index
    %c0_46 = arith.constant 0 : index
    %67 = vector.load %arg6[%c3_44, %c0_45, %c0_46] : memref<4x8x128xf32, #tpu.memory_space<vmem>>, vector<1x8x128xf32>
    %68 = vector.shape_cast %67 : vector<1x8x128xf32> to vector<8x128xf32>
    %69 = arith.subf %64, %68 : vector<8x128xf32>
    %cst_47 = arith.constant 5.000000e-01 : f32
    %70 = vector.broadcast %cst_47 : f32 to vector<8x128xf32>
    %71 = arith.mulf %69, %70 : vector<8x128xf32>
    %72 = arith.addf %66, %71 : vector<8x128xf32>
    %cst_48 = arith.constant 1.000000e+00 : f32
    %73 = vector.broadcast %cst_48 : f32 to vector<8x128xf32>
    %74 = arith.cmpf oge, %72, %73 : vector<8x128xf32>
    %cst_49 = arith.constant 0.000000e+00 : f32
    %75 = vector.broadcast %cst_49 : f32 to vector<8x128xf32>
    %76 = arith.select %74, %75, %72 : vector<8x128xi1>, vector<8x128xf32>
    %c3_50 = arith.constant 3 : index
    %c0_51 = arith.constant 0 : index
    %c0_52 = arith.constant 0 : index
    %77 = vector.load %arg6[%c3_50, %c0_51, %c0_52] : memref<4x8x128xf32, #tpu.memory_space<vmem>>, vector<1x8x128xf32>
    %78 = vector.shape_cast %77 : vector<1x8x128xf32> to vector<8x128xf32>
    %79 = vector.shape_cast %76 : vector<8x128xf32> to vector<1x8x128xf32>
    tpu.vector_store %arg6[%c3_50, %c0_51, %c0_52], %79 {strides = array<i32>} : memref<4x8x128xf32, #tpu.memory_space<vmem>>, vector<1x8x128xf32>,
    %80 = arith.ori %62, %74 : vector<8x128xi1>
    %81 = arith.extui %80 : vector<8x128xi1> to vector<8x128xi32>
    %82 = arith.sitofp %81 : vector<8x128xi32> to vector<8x128xf32>
    %83 = arith.truncf %82 : vector<8x128xf32> to vector<8x128xbf16>
    %c0_53 = arith.constant 0 : index
    %c0_54 = arith.constant 0 : index
    %c0_55 = arith.constant 0 : index
    %84 = vector.load %arg5[%c0_53, %c0_54, %c0_55] : memref<1x8x128xbf16, #tpu.memory_space<vmem>>, vector<1x8x128xbf16>
    %85 = vector.shape_cast %84 : vector<1x8x128xbf16> to vector<8x128xbf16>
    %86 = vector.shape_cast %83 : vector<8x128xbf16> to vector<1x8x128xbf16>
    tpu.vector_store %arg5[%c0_53, %c0_54, %c0_55], %86 {strides = array<i32>} : memref<1x8x128xbf16, #tpu.memory_space<vmem>>, vector<1x8x128xbf16>,
    return
  }
  func.func @transform_0(%arg0: i32, %arg1: i32) -> (i32, i32, i32, i32) {
    %c0_i32 = arith.constant 0 : i32
    %c0_i32_0 = arith.constant 0 : i32
    %c0_i32_1 = arith.constant 0 : i32
    return %arg1, %arg0, %c0_i32, %c0_i32_0 : i32, i32, i32, i32
  }
  func.func @transform_1(%arg0: i32, %arg1: i32) -> (i32, i32) {
    %c0_i32 = arith.constant 0 : i32
    %c0_i32_0 = arith.constant 0 : i32
    %c0_i32_1 = arith.constant 0 : i32
    return %c0_i32, %c0_i32_0 : i32, i32
  }
  func.func @transform_2(%arg0: i32, %arg1: i32) -> (i32, i32) {
    %c0_i32 = arith.constant 0 : i32
    %c0_i32_0 = arith.constant 0 : i32
    %c0_i32_1 = arith.constant 0 : i32
    return %c0_i32, %c0_i32_0 : i32, i32
  }
  func.func @transform_3(%arg0: i32, %arg1: i32) -> (i32, i32, i32) {
    %c0_i32 = arith.constant 0 : i32
    %c0_i32_0 = arith.constant 0 : i32
    return %arg1, %c0_i32, %arg0 : i32, i32, i32
  }
}

module attributes {stable_mosaic.version = 11 : i64} {
  func.func @kernel(%arg0: i32, %arg1: memref<6x512xbf16, #tpu.memory_space<vmem>>, %arg2: memref<512x128xbf16, #tpu.memory_space<vmem>>, %arg3: memref<1x128xf32, #tpu.memory_space<vmem>>, %arg4: memref<6x128xf32, #tpu.memory_space<vmem>>) attributes {dimension_semantics = [#tpu.dimension_semantics<arbitrary>], iteration_bounds = array<i64: 1>, scalar_prefetch = 0 : i64, scratch_operands = 0 : i64, tpu.core_type = #tpu.core_type<tc>, window_params = [{pipeline_mode = #tpu.pipeline_mode<synchronous>, transform_indices = @transform_0, window_bounds = array<i64: 6, 512>}, {pipeline_mode = #tpu.pipeline_mode<synchronous>, transform_indices = @transform_1, window_bounds = array<i64: 512, 128>}, {pipeline_mode = #tpu.pipeline_mode<synchronous>, transform_indices = @transform_2, window_bounds = array<i64: 1, 128>}, {pipeline_mode = #tpu.pipeline_mode<synchronous>, transform_indices = @transform_3, window_bounds = array<i64: 6, 128>}]} {
    %c0 = arith.constant 0 : index
    %c0_0 = arith.constant 0 : index
    %0 = vector.load %arg1[%c0, %c0_0] : memref<6x512xbf16, #tpu.memory_space<vmem>>, vector<6x512xbf16>
    %c0_1 = arith.constant 0 : index
    %c0_2 = arith.constant 0 : index
    %1 = vector.load %arg2[%c0_1, %c0_2] : memref<512x128xbf16, #tpu.memory_space<vmem>>, vector<512x128xbf16>
    %cst = arith.constant dense<0.000000e+00> : vector<6x128xf32>
    %2 = tpu.matmul %0, %1, %cst {dimension_numbers = #tpu.dot_dimension_numbers<[1], [0], [0], [1], [0, 0, 1, 1], [], []>} : vector<6x512xbf16>, vector<512x128xbf16>, vector<6x128xf32> -> vector<6x128xf32>
    %c0_3 = arith.constant 0 : index
    %c0_4 = arith.constant 0 : index
    %3 = vector.load %arg3[%c0_3, %c0_4] : memref<1x128xf32, #tpu.memory_space<vmem>>, vector<1x128xf32>
    %4 = vector.broadcast %3 : vector<1x128xf32> to vector<6x128xf32>
    %5 = arith.addf %2, %4 : vector<6x128xf32>
    %cst_5 = arith.constant 0.000000e+00 : f32
    %6 = vector.broadcast %cst_5 : f32 to vector<2x128xf32>
    %7 = vector.extract_strided_slice %5 {offsets = [0, 0], sizes = [2, 128], strides = [1, 1]} : vector<6x128xf32> to vector<2x128xf32>
    %8 = arith.subf %7, %6 : vector<2x128xf32>
    %cst_6 = arith.constant 5.000000e-01 : f32
    %9 = vector.broadcast %cst_6 : f32 to vector<2x128xf32>
    %10 = arith.mulf %8, %9 : vector<2x128xf32>
    %11 = arith.addf %6, %10 : vector<2x128xf32>
    %cst_7 = arith.constant 1.000000e+00 : f32
    %12 = vector.broadcast %cst_7 : f32 to vector<2x128xf32>
    %13 = arith.cmpf oge, %11, %12 : vector<2x128xf32>
    %14 = arith.extui %13 : vector<2x128xi1> to vector<2x128xi32>
    %15 = arith.sitofp %14 : vector<2x128xi32> to vector<2x128xf32>
    %c0_8 = arith.constant 0 : index
    %c0_9 = arith.constant 0 : index
    %16 = vector.load %arg4[%c0_8, %c0_9] : memref<6x128xf32, #tpu.memory_space<vmem>>, vector<2x128xf32>
    tpu.vector_store %arg4[%c0_8, %c0_9], %15 {strides = array<i32>} : memref<6x128xf32, #tpu.memory_space<vmem>>, vector<2x128xf32>,
    %cst_10 = arith.constant 0.000000e+00 : f32
    %17 = vector.broadcast %cst_10 : f32 to vector<2x128xf32>
    %18 = arith.select %13, %17, %11 : vector<2x128xi1>, vector<2x128xf32>
    %19 = vector.extract_strided_slice %5 {offsets = [2, 0], sizes = [2, 128], strides = [1, 1]} : vector<6x128xf32> to vector<2x128xf32>
    %20 = arith.subf %19, %18 : vector<2x128xf32>
    %cst_11 = arith.constant 5.000000e-01 : f32
    %21 = vector.broadcast %cst_11 : f32 to vector<2x128xf32>
    %22 = arith.mulf %20, %21 : vector<2x128xf32>
    %23 = arith.addf %18, %22 : vector<2x128xf32>
    %cst_12 = arith.constant 1.000000e+00 : f32
    %24 = vector.broadcast %cst_12 : f32 to vector<2x128xf32>
    %25 = arith.cmpf oge, %23, %24 : vector<2x128xf32>
    %26 = arith.extui %25 : vector<2x128xi1> to vector<2x128xi32>
    %27 = arith.sitofp %26 : vector<2x128xi32> to vector<2x128xf32>
    %c2 = arith.constant 2 : index
    %c0_13 = arith.constant 0 : index
    %28 = vector.load %arg4[%c2, %c0_13] : memref<6x128xf32, #tpu.memory_space<vmem>>, vector<2x128xf32>
    tpu.vector_store %arg4[%c2, %c0_13], %27 {strides = array<i32>} : memref<6x128xf32, #tpu.memory_space<vmem>>, vector<2x128xf32>,
    %cst_14 = arith.constant 0.000000e+00 : f32
    %29 = vector.broadcast %cst_14 : f32 to vector<2x128xf32>
    %30 = arith.select %25, %29, %23 : vector<2x128xi1>, vector<2x128xf32>
    %31 = vector.extract_strided_slice %5 {offsets = [4, 0], sizes = [2, 128], strides = [1, 1]} : vector<6x128xf32> to vector<2x128xf32>
    %32 = arith.subf %31, %30 : vector<2x128xf32>
    %cst_15 = arith.constant 5.000000e-01 : f32
    %33 = vector.broadcast %cst_15 : f32 to vector<2x128xf32>
    %34 = arith.mulf %32, %33 : vector<2x128xf32>
    %35 = arith.addf %30, %34 : vector<2x128xf32>
    %cst_16 = arith.constant 1.000000e+00 : f32
    %36 = vector.broadcast %cst_16 : f32 to vector<2x128xf32>
    %37 = arith.cmpf oge, %35, %36 : vector<2x128xf32>
    %38 = arith.extui %37 : vector<2x128xi1> to vector<2x128xi32>
    %39 = arith.sitofp %38 : vector<2x128xi32> to vector<2x128xf32>
    %c4 = arith.constant 4 : index
    %c0_17 = arith.constant 0 : index
    %40 = vector.load %arg4[%c4, %c0_17] : memref<6x128xf32, #tpu.memory_space<vmem>>, vector<2x128xf32>
    tpu.vector_store %arg4[%c4, %c0_17], %39 {strides = array<i32>} : memref<6x128xf32, #tpu.memory_space<vmem>>, vector<2x128xf32>,
    return
  }
  func.func @transform_0(%arg0: i32) -> (i32, i32) {
    %c0_i32 = arith.constant 0 : i32
    %c0_i32_0 = arith.constant 0 : i32
    %c0_i32_1 = arith.constant 0 : i32
    return %c0_i32, %c0_i32_0 : i32, i32
  }
  func.func @transform_1(%arg0: i32) -> (i32, i32) {
    %c0_i32 = arith.constant 0 : i32
    %c0_i32_0 = arith.constant 0 : i32
    %c0_i32_1 = arith.constant 0 : i32
    return %c0_i32, %c0_i32_0 : i32, i32
  }
  func.func @transform_2(%arg0: i32) -> (i32, i32) {
    %c0_i32 = arith.constant 0 : i32
    %c0_i32_0 = arith.constant 0 : i32
    %c0_i32_1 = arith.constant 0 : i32
    return %c0_i32, %c0_i32_0 : i32, i32
  }
  func.func @transform_3(%arg0: i32) -> (i32, i32) {
    %c0_i32 = arith.constant 0 : i32
    %c0_i32_0 = arith.constant 0 : i32
    %c0_i32_1 = arith.constant 0 : i32
    return %c0_i32, %c0_i32_0 : i32, i32
  }
}

</mosaic_0001>

<bundles_post_ra>
// kernel: connected_conv2d_block_forward.3
= control target key start
LH: loop header
LB: loop body
LE: loop exit
PB: predicated region body
PF: predicated region fallthrough
CT: control target
= control target key end

     0   :  { %s644_s12 = smov 0   ;;  %s646_s13 = smov 0   ;;  %s701_s0 = inlined_call_operand.vmem [shape: bf16[3,1,96,512], index: 0, kind: input, shape index: {}]   ;;  %s702_s1 = inlined_call_operand.vmem [shape: bf16[8,40], index: 1, kind: input, shape index: {}]   ;;  %s703_s2 = inlined_call_operand.vmem [shape: f32[1,8,1], index: 2, kind: output, shape index: {0}]   ;;  %s704_s3 = inlined_call_operand.vmem [shape: f32[1,8,1], index: 3, kind: output, shape index: {1}]  }
   0x1   :  { %s648_s14 = smov 0  }
   0x2 LB: > { %s23_s15 = sadd.s32 1, %s616_s13  ;;  %p531_p0 = scmp.ge.s32.totalorder %s620_s14, 1  ;;  %s620_s14 = sphi %s648_s14, %s14_s14   ;;  %s616_s13 = sphi %s646_s13, %s706_s13   ;;  %s612_s12 = sphi %s644_s12, %s705_s12  }
   0x3   : > { %p24_p1 = scmp.ge.s32.totalorder %s23_s15, 3  ;;  %p158_p2 = scmp.lt.s32.totalorder %s620_s14, 4 }
   0x5   : > { %s708_s15 = smov (%p24_p1, %s23_s15), 0  ;;  %p159_p3 = pnand %p531_p0, %p158_p2 }
   0x6   : > { %p189_p4 = scmp.lt.s32.totalorder (!%p159_p3), %s612_s12, 2  ;;  %p533_p5 = scmp.ne.s32.totalorder (!%p159_p3), %s612_s12, 0 }
   0x7   : > { %162 = sbr.rel (%p159_p3) target bundleno = 412 (0x19c), region = 28 }
   0xe   : > { %s190_s16 = scalar_select %p189_p4, %s612_s12, 2 }
   0xf   : > { %210 = sbr.rel (%p533_p5) target bundleno = 22 (0x16), region = 32  ;;  %v622_v0 = vmov (!%p533_p5), 0.0  }
  0x10   : > { %s555_s17 = smul.u32 192, %s190_s16  ;;  %211 = vst [vmem:[#allocation2] sm:$0xff] (!%p533_p5), %v622_v0  ;;  %212 = vst [vmem:[#allocation2 + $0x8] sm:$0xff] (!%p533_p5), %v622_v0 }
  0x11   : > { %213 = vst [vmem:[#allocation2 + $0x10] sm:$0xff] (!%p533_p5), %v622_v0  ;;  %214 = vst [vmem:[#allocation2 + $0x18] sm:$0xff] (!%p533_p5), %v622_v0 }
  0x12   : > { %s669_s20 = scalar_lea.vmem %s701_s0, %s555_s17  ;;  %215 = vst [vmem:[#allocation3] sm:$0xff] (!%p533_p5), %v622_v0  ;;  %216 = vst [vmem:[#allocation3 + $0x8] sm:$0xff] (!%p533_p5), %v622_v0 }
  0x13   : > { %217 = vst [vmem:[#allocation3 + $0x10] sm:$0xff] (!%p533_p5), %v622_v0  ;;  %218 = vst [vmem:[#allocation3 + $0x18] sm:$0xff] (!%p533_p5), %v622_v0 }
  0x16 PF: > { %v582_v1 = vld [vmem:[%s669_s20 + $0x4] ss:$16 sps:$4 sm:$0xff]   ;;  %v584_v2 = vld [vmem:[%s669_s20 + $0xc] ss:$16 sps:$4 sm:$0xff]   ;;  %v623_v3 = vmov 0   ;;  %vm284_vm0 = vcmask 1043456  }
  0x17   : > { %329 = vmatprep.mubr.bf16.mxu0 %v623_v3  ;;  %370 = vmatprep.mubr.bf16.mxu1 %v623_v3  ;;  %v586_v4 = vld [vmem:[%s669_s20] ss:$16 sps:$4 sm:$0xff]   ;;  %v587_v5 = vld [vmem:[%s669_s20 + $0x8] ss:$16 sps:$4 sm:$0xff]   ;;  %v588_v6 = vld [vmem:[%s669_s20 + $0x24] ss:$16 sps:$4 sm:$0xff]  }
  0x18   : > { %297 = vmatprep.subr.bf16.mxu0 %v582_v1  ;;  %338 = vmatprep.subr.bf16.mxu1 %v584_v2  ;;  %v590_v7 = vld [vmem:[%s669_s20 + $0x2c] ss:$16 sps:$4 sm:$0xff]   ;;  %v592_v8 = vld [vmem:[%s669_s20 + $0x20] ss:$16 sps:$4 sm:$0xff]   ;;  %v593_v9 = vld [vmem:[%s669_s20 + $0x28] ss:$16 sps:$4 sm:$0xff]  }
  0x19   : > { %298 = vmatpush1.bf16.msra.mxu0 %v586_v4  ;;  %339 = vmatpush1.bf16.msra.mxu1 %v587_v5  ;;  %v228_v10 = vld [vmem:[%s669_s20 + $0x40] sm:$0xff]  ;;  %v229_v11 = vld [vmem:[%s669_s20 + $0x48] sm:$0xff]  ;;  %vm280_vm1 = vcmask 326656   ;;  %v381_v20 = vld [vmem:[#allocation2 + $0x10] sm:$0xff]  ;;  %p550_p6 = scmp.ne.s32.totalorder %s612_s12, 2 }
  0x1a   : > { %299 = vmatprep.subr.bf16.mxu0 %v588_v6  ;;  %340 = vmatprep.subr.bf16.mxu1 %v590_v7  ;;  %v543_v12 = vcombine.high %v228_v10, %v228_v10  ;;  %v545_v13 = vcombine.high %v229_v11, %v229_v11  ;;  %v542_v14 = vcombine.low %v228_v10, %v228_v10  ;;  %v219_v18 = vld [vmem:[%s702_s1] sm:$0xf]  ;;  %v380_v21 = vld [vmem:[#allocation2 + $0x8] sm:$0xff]  ;;  %v382_v22 = vld [vmem:[#allocation2 + $0x18] sm:$0xff]  ;;  %vm420_vm2 = vcmask (!%p550_p6), 7168  }
  0x1b   : > { %v544_v15 = vcombine.low %v229_v11, %v229_v11  ;;  %v379_v19 = vld [vmem:[#allocation2] sm:$0xff]  ;;  %v393_v26 = vld [vmem:[#allocation3 + $0x10] sm:$0xff]  ;;  %v392_v32 = vld [vmem:[#allocation3 + $0x8] sm:$0xff] }
  0x1c   : > { %v286_v16 = vsel %vm284_vm0, %v542_v14, 0  ;;  %v391_v24 = vld [vmem:[#allocation3] sm:$0xff]  ;;  %v394_v34 = vld [vmem:[#allocation3 + $0x18] sm:$0xff] }
  0x1d   : > { %300 = vmatpush1.bf16.msra.mxu0 %v592_v8  ;;  %341 = vmatpush1.bf16.msra.mxu1 %v593_v9  ;;  %v292_v17 = vsel %vm284_vm0, %v544_v15, 0 }
  0x1e   : > { %546 = vmatprep.subr.msk.bf16.mxu0 %vm284_vm0, %v543_v12  ;;  %548 = vmatprep.subr.msk.bf16.mxu1 %vm284_vm0, %v545_v13 }
  0x21   : > { %302 = vmatpush1.bf16.msra.mxu0 %v286_v16  ;;  %343 = vmatpush1.bf16.msra.mxu1 %v292_v17 }
  0x24   : > { %547 = vmatmul.mubr.msk.bf16.vlgmr.msra.gmra.mrb[0].mxu0 %vm280_vm1, %v219_v18  ;;  %549 = vmatmul.mubr.msk.bf16.vlgmr.msra.gmra.mrb[0].mxu1 %vm280_vm1, %v219_v18 }
  0xf7   : > { %v331_v23 = vpop.f32.mrb[0].mxu0  ;;  %v372_v25 = vpop.f32.mrb[0].mxu1  ;;  %410 = sbr.rel (%p550_p6) target bundleno = 412 (0x19c), region = 36 }
  0xf8   : > { %v383_v27 = vadd.f32 %v379_v19, %v331_v23  ;;  %v395_v28 = vmul.f32 %v331_v23, %v331_v23  ;;  %v385_v29 = vadd.f32 %v381_v20, %v372_v25  ;;  %v397_v30 = vmul.f32 %v372_v25, %v372_v25  ;;  %v333_v31 = vpop.f32.mrb[1].mxu0  ;;  %v374_v33 = vpop.f32.mrb[1].mxu1 }
  0xf9   : > { %v384_v35 = vadd.f32 %v380_v21, %v333_v31  ;;  %v396_v36 = vmul.f32 %v333_v31, %v333_v31  ;;  %v386_v37 = vadd.f32 %v382_v22, %v374_v33  ;;  %v398_v38 = vmul.f32 %v374_v33, %v374_v33  ;;  %v335_v39 = vpop.f32.mrb[2].mxu0  ;;  %v376_v40 = vpop.f32.mrb[2].mxu1 }
  0xfa   : > { %387 = vst [vmem:[#allocation2] sm:$0xff] %v383_v27  ;;  %v399_v41 = vadd.f32 %v395_v28, %v391_v24  ;;  %389 = vst [vmem:[#allocation2 + $0x10] sm:$0xff] %v385_v29  ;;  %v401_v42 = vadd.f32 %v397_v30, %v393_v26  ;;  %v336_v43 = vpop.f32.mrb[3].mxu0  ;;  %v377_v44 = vpop.f32.mrb[3].mxu1 }
  0xfb   : > { %388 = vst [vmem:[#allocation2 + $0x8] sm:$0xff] %v384_v35  ;;  %v400_v45 = vadd.f32 %v396_v36, %v392_v32  ;;  %390 = vst [vmem:[#allocation2 + $0x18] sm:$0xff] %v386_v37  ;;  %v402_v46 = vadd.f32 %v398_v38, %v394_v34 }
  0xfc   : > { %403 = vst [vmem:[#allocation3] sm:$0xff] %v399_v41  ;;  %405 = vst [vmem:[#allocation3 + $0x10] sm:$0xff] %v401_v42 }
  0xfd   : > { %404 = vst [vmem:[#allocation3 + $0x8] sm:$0xff] %v400_v45  ;;  %406 = vst [vmem:[#allocation3 + $0x18] sm:$0xff] %v402_v46 }
 0x101   : > { %v411_v47 = vld [vmem:[#allocation2] sm:$0xff]  ;;  %v413_v49 = vld [vmem:[#allocation2 + $0x10] sm:$0xff] }
 0x102   : > { %v412_v48 = vld [vmem:[#allocation2 + $0x8] sm:$0xff]  ;;  %v414_v53 = vld [vmem:[#allocation2 + $0x18] sm:$0xff] }
 0x103   : > { %v415_v50 = vadd.f32 %v412_v48, %v411_v47  ;;  %v422_v51 = vld [vmem:[#allocation3] sm:$0xff]  ;;  %v424_v54 = vld [vmem:[#allocation3 + $0x10] sm:$0xff] }
 0x104   : > { %v423_v52 = vld [vmem:[#allocation3 + $0x8] sm:$0xff]  ;;  %v425_v57 = vld [vmem:[#allocation3 + $0x18] sm:$0xff] }
 0x105   : > { %v426_v55 = vadd.f32 %v423_v52, %v422_v51  ;;  %v416_v56 = vadd.f32 %v415_v50, %v413_v49 }
 0x107   : > { %v427_v58 = vadd.f32 %v426_v55, %v424_v54  ;;  %v417_v59 = vadd.f32 %v416_v56, %v414_v53 }
 0x109   : > { %418 = vadd.xlane.f32.xlu0 %v417_v59  ;;  %v428_v60 = vadd.f32 %v427_v58, %v425_v57 }
 0x10d   : > { %429 = vadd.xlane.f32.xlu0 %v428_v60 }
 0x196   : > { %v419_v61 = vpop.xlane.xlu0 %418 }
 0x197   : > { %421 = vst.msk [vmem:[%s703_s2] sm:$0xff] %vm420_vm2, %v419_v61 }
 0x19a   : > { %v430_v62 = vpop.xlane.xlu0 %429 }
 0x19b   : > { %431 = vst.msk [vmem:[%s704_s3] sm:$0xff] %vm420_vm2, %v430_v62 }
 0x19c PF: > { %s14_s14 = sadd.s32 1, %s620_s14   ;;  %s705_s12 = smov %s616_s13 }
 0x19d   : > { %p11_p7 = scmp.ge.s32.totalorder %s14_s14, 5   ;;  %s706_s13 = smov %s708_s15 }
 0x19f   :  { %13 = sbr.rel (!%p11_p7) target bundleno = 2 (0x2), region = 78 }

// kernel: connected_conv2d_block_forward.4
= control target key start
LH: loop header
LB: loop body
LE: loop exit
PB: predicated region body
PF: predicated region fallthrough
CT: control target
= control target key end

     0   :  { %s720_s12 = smov 0   ;;  %s722_s13 = smov 0   ;;  %s788_s0 = inlined_call_operand.vmem [shape: bf16[3,1,96,512], index: 0, kind: input, shape index: {}]   ;;  %s789_s1 = inlined_call_operand.vmem [shape: bf16[8,96], index: 1, kind: input, shape index: {}]   ;;  %s790_s2 = inlined_call_operand.vmem [shape: f32[8,1], index: 2, kind: input, shape index: {}]   ;;  %s791_s3 = inlined_call_operand.vmem [shape: bf16[3,8,128], index: 3, kind: output, shape index: {}]  }
   0x1   :  { %s724_s14 = smov 0  }
   0x2 LB: > { %s22_s15 = sadd.s32 1, %s691_s13  ;;  %p575_p0 = scmp.ge.s32.totalorder %s695_s14, 1  ;;  %s695_s14 = sphi %s724_s14, %s13_s14   ;;  %s691_s13 = sphi %s722_s13, %s793_s13   ;;  %s687_s12 = sphi %s720_s12, %s792_s12  }
   0x3   : > { %p23_p1 = scmp.ge.s32.totalorder %s22_s15, 3  ;;  %p157_p2 = scmp.lt.s32.totalorder %s695_s14, 4 }
   0x5   : > { %s795_s15 = smov (%p23_p1, %s22_s15), 0  ;;  %p158_p3 = pnand %p575_p0, %p157_p2 }
   0x6   : > { %p187_p4 = scmp.lt.s32.totalorder (!%p158_p3), %s687_s12, 2  ;;  %p578_p5 = scmp.ne.s32.totalorder (!%p158_p3), %s687_s12, 0 }
   0x7   : > { %161 = sbr.rel (%p158_p3) target bundleno = 278 (0x116), region = 32 }
   0xe   : > { %s188_s16 = scalar_select %p187_p4, %s687_s12, 2 }
   0xf   : > { %207 = sbr.rel (%p578_p5) target bundleno = 22 (0x16), region = 36  ;;  %v697_v0 = vmov (!%p578_p5), 0.0  }
  0x10   : > { %s608_s17 = smul.u32 192, %s188_s16  ;;  %s577_s18 = sshll.u32 %s188_s16, 2  ;;  %208 = vst [vmem:[#allocation2] sm:$0xff] (!%p578_p5), %v697_v0  ;;  %209 = vst [vmem:[#allocation2 + $0x8] sm:$0xff] (!%p578_p5), %v697_v0 }
  0x11   : > { %s741_s21 = scalar_lea.vmem %s791_s3, %s577_s18  ;;  %210 = vst [vmem:[#allocation2 + $0x10] sm:$0xff] (!%p578_p5), %v697_v0  ;;  %211 = vst [vmem:[#allocation2 + $0x18] sm:$0xff] (!%p578_p5), %v697_v0 }
  0x12   : > { %s746_s24 = scalar_lea.vmem %s788_s0, %s608_s17 }
  0x16 PF: > { %v637_v1 = vld [vmem:[%s746_s24 + $0x4] ss:$16 sps:$4 sm:$0xff]   ;;  %v639_v2 = vld [vmem:[%s746_s24 + $0xc] ss:$16 sps:$4 sm:$0xff]   ;;  %v698_v3 = vmov 0   ;;  %vm357_vm0 = vcmask 785408  }
  0x17   : > { %393 = vmatprep.mubr.bf16.mxu0 %v698_v3  ;;  %434 = vmatprep.mubr.bf16.mxu1 %v698_v3  ;;  %v641_v4 = vld [vmem:[%s746_s24] ss:$16 sps:$4 sm:$0xff]   ;;  %v642_v5 = vld [vmem:[%s746_s24 + $0x8] ss:$16 sps:$4 sm:$0xff]   ;;  %v643_v6 = vld [vmem:[%s746_s24 + $0x24] ss:$16 sps:$4 sm:$0xff]  }
  0x18   : > { %361 = vmatprep.subr.bf16.mxu0 %v637_v1  ;;  %636 = vset.pattern.permute.xlu0 %v698_v3  ;;  %v645_v7 = vld [vmem:[%s746_s24 + $0x2c] ss:$16 sps:$4 sm:$0xff]   ;;  %v647_v8 = vld [vmem:[%s746_s24 + $0x20] ss:$16 sps:$4 sm:$0xff]   ;;  %v648_v9 = vld [vmem:[%s746_s24 + $0x28] ss:$16 sps:$4 sm:$0xff]  }
  0x19   : > { %402 = vmatprep.subr.bf16.mxu1 %v639_v2  ;;  %362 = vmatpush1.bf16.msra.mxu0 %v641_v4  ;;  %v649_v10 = vld [vmem:[%s746_s24 + $0x44] ss:$16 sps:$4 sm:$0xff]   ;;  %v651_v11 = vld [vmem:[%s746_s24 + $0x4c] ss:$16 sps:$4 sm:$0xff]   ;;  %v653_v12 = vld [vmem:[%s746_s24 + $0x40] ss:$16 sps:$4 sm:$0xff]  }
  0x1a   : > { %403 = vmatpush1.bf16.msra.mxu1 %v642_v5  ;;  %363 = vmatprep.subr.bf16.mxu0 %v643_v6  ;;  %v654_v13 = vld [vmem:[%s746_s24 + $0x48] ss:$16 sps:$4 sm:$0xff]   ;;  %v655_v14 = vld [vmem:[%s746_s24 + $0x64] ss:$16 sps:$4 sm:$0xff]   ;;  %v657_v15 = vld [vmem:[%s746_s24 + $0x6c] ss:$16 sps:$4 sm:$0xff]  }
  0x1b   : > { %404 = vmatprep.subr.bf16.mxu1 %v645_v7  ;;  %v659_v16 = vld [vmem:[%s746_s24 + $0x60] ss:$16 sps:$4 sm:$0xff]   ;;  %v660_v17 = vld [vmem:[%s746_s24 + $0x68] ss:$16 sps:$4 sm:$0xff]   ;;  %v661_v18 = vld [vmem:[%s746_s24 + $0x84] ss:$16 sps:$4 sm:$0xff]  }
  0x1c   : > { %v663_v19 = vld [vmem:[%s746_s24 + $0x8c] ss:$16 sps:$4 sm:$0xff]   ;;  %v665_v20 = vld [vmem:[%s746_s24 + $0x80] ss:$16 sps:$4 sm:$0xff]   ;;  %v666_v21 = vld [vmem:[%s746_s24 + $0x88] ss:$16 sps:$4 sm:$0xff]  }
  0x1d   : > { %364 = vmatpush1.bf16.msra.mxu0 %v647_v8  ;;  %v443_v22 = vld [vmem:[%s790_s2] sm:$0xff]  ;;  %v669_v24 = vld [vmem:[%s746_s24 + $0xac] ss:$16 sps:$4 sm:$0xff]   ;;  %v672_v26 = vld [vmem:[%s746_s24 + $0xa8] ss:$16 sps:$4 sm:$0xff]   ;;  %v699_v61 = vmov 0.0  }
  0x1e   : > { %405 = vmatpush1.bf16.msra.mxu1 %v648_v9  ;;  %365 = vmatprep.subr.bf16.mxu0 %v649_v10  ;;  %v667_v23 = vld [vmem:[%s746_s24 + $0xa4] ss:$16 sps:$4 sm:$0xff]   ;;  %v671_v25 = vld [vmem:[%s746_s24 + $0xa0] ss:$16 sps:$4 sm:$0xff]   ;;  %v459_v36 = vld [vmem:[#allocation2 + $0x8] sm:$0xff] }
  0x1f   : > { %406 = vmatprep.subr.bf16.mxu1 %v651_v11  ;;  %446 = vperm.xlu0 %636, %v443_v22   ;;  %v212_v27 = vld [vmem:[%s789_s1] sm:$0xf]  ;;  %v469_v32 = vld [vmem:[#allocation2 + $0x10] sm:$0xff]  ;;  %v479_v38 = vld [vmem:[#allocation2 + $0x18] sm:$0xff] }
  0x20   : > { %v450_v30 = vld [vmem:[#allocation2] sm:$0xff] }
  0x21   : > { %366 = vmatpush1.bf16.msra.mxu0 %v653_v12 }
  0x22   : > { %407 = vmatpush1.bf16.msra.mxu1 %v654_v13  ;;  %367 = vmatprep.subr.bf16.mxu0 %v655_v14 }
  0x23   : > { %408 = vmatprep.subr.bf16.mxu1 %v657_v15 }
  0x25   : > { %368 = vmatpush1.bf16.msra.mxu0 %v659_v16 }
  0x26   : > { %409 = vmatpush1.bf16.msra.mxu1 %v660_v17  ;;  %369 = vmatprep.subr.bf16.mxu0 %v661_v18 }
  0x27   : > { %410 = vmatprep.subr.bf16.mxu1 %v663_v19 }
  0x29   : > { %370 = vmatpush1.bf16.msra.mxu0 %v665_v20 }
  0x2a   : > { %411 = vmatpush1.bf16.msra.mxu1 %v666_v21  ;;  %371 = vmatprep.subr.bf16.mxu0 %v667_v23 }
  0x2b   : > { %412 = vmatprep.subr.bf16.mxu1 %v669_v24 }
  0x2d   : > { %372 = vmatpush1.bf16.msra.mxu0 %v671_v25 }
  0x2e   : > { %413 = vmatpush1.bf16.msra.mxu1 %v672_v26 }
  0x30   : > { %603 = vmatmul.mubr.msk.bf16.vlgmr.msra.gmra.mrb[0].mxu0 %vm357_vm0, %v212_v27 }
  0x31   : > { %604 = vmatmul.mubr.msk.bf16.vlgmr.msra.gmra.mrb[0].mxu1 %vm357_vm0, %v212_v27 }
  0x9e   : > { %v447_v28 = vpop.permute.xlu0 %446 }
 0x103   : > { %v395_v29 = vpop.f32.mrb[0].mxu0 }
 0x104   : > { %v436_v31 = vpop.f32.mrb[0].mxu1  ;;  %v449_v33 = vadd.f32 %v447_v28, %v395_v29  ;;  %v397_v35 = vpop.f32.mrb[1].mxu0 }
 0x105   : > { %v467_v34 = vadd.f32 %v447_v28, %v436_v31  ;;  %v438_v37 = vpop.f32.mrb[1].mxu1  ;;  %v457_v39 = vadd.f32 %v447_v28, %v397_v35  ;;  %v399_v41 = vpop.f32.mrb[2].mxu0 }
 0x106   : > { %v477_v40 = vadd.f32 %v447_v28, %v438_v37  ;;  %v440_v42 = vpop.f32.mrb[2].mxu1  ;;  %v451_v43 = vsub.f32 %v449_v33, %v450_v30  ;;  %v400_v45 = vpop.f32.mrb[3].mxu0 }
 0x107   : > { %v470_v44 = vsub.f32 %v467_v34, %v469_v32  ;;  %v441_v46 = vpop.f32.mrb[3].mxu1  ;;  %v460_v47 = vsub.f32 %v457_v39, %v459_v36 }
 0x108   : > { %v480_v48 = vsub.f32 %v477_v40, %v479_v38  ;;  %v452_v49 = vmul.f32 0.5, %v451_v43 }
 0x109   : > { %v471_v50 = vmul.f32 0.5, %v470_v44  ;;  %v461_v51 = vmul.f32 0.5, %v460_v47 }
 0x10a   : > { %v481_v52 = vmul.f32 0.5, %v480_v48  ;;  %v453_v53 = vadd.f32 %v452_v49, %v450_v30 }
 0x10b   : > { %v472_v54 = vadd.f32 %v471_v50, %v469_v32  ;;  %v462_v55 = vadd.f32 %v461_v51, %v459_v36 }
 0x10c   : > { %v482_v56 = vadd.f32 %v481_v52, %v479_v38  ;;  %vm454_vm1 = vcmp.ge.f32.partialorder %v453_v53, 1.0 }
 0x10d   : > { %vm473_vm2 = vcmp.ge.f32.partialorder %v472_v54, 1.0  ;;  %v455_v57 = vsel %vm454_vm1, 0.0, %v453_v53  ;;  %vm463_vm3 = vcmp.ge.f32.partialorder %v462_v55, 1.0 }
 0x10e   : > { %v474_v58 = vsel %vm473_vm2, 0.0, %v472_v54  ;;  %vm483_vm4 = vcmp.ge.f32.partialorder %v482_v56, 1.0  ;;  %456 = vst [vmem:[#allocation2] sm:$0xff] %v455_v57  ;;  %v464_v59 = vsel %vm463_vm3, 0.0, %v462_v55  ;;  %vm466_vm5 = vmor %vm454_vm1, %vm463_vm3 }
 0x10f   : > { %475 = vst [vmem:[#allocation2 + $0x10] sm:$0xff] %v474_v58  ;;  %v484_v60 = vsel %vm483_vm4, 0.0, %v482_v56  ;;  %465 = vst [vmem:[#allocation2 + $0x8] sm:$0xff] %v464_v59 }
 0x110   : > { %vm476_vm6 = vmor %vm466_vm5, %vm473_vm2  ;;  %485 = vst [vmem:[#allocation2 + $0x18] sm:$0xff] %v484_v60 }
 0x111   : > { %vm486_vm7 = vmor %vm476_vm6, %vm483_vm4 }
 0x112   : > { %v605_v62 = vsel %vm486_vm7, 1.0, %v699_v61 }
 0x113   : > { %v489_v63 = vpack.c.bf16 %v605_v62, %v605_v62 }
 0x115   : > { %490 = vst [vmem:[%s741_s21] sm:$0xf] %v489_v63 }
 0x116 PF: > { %s13_s14 = sadd.s32 1, %s695_s14   ;;  %s792_s12 = smov %s691_s13 }
 0x117   : > { %p10_p6 = scmp.ge.s32.totalorder %s13_s14, 5   ;;  %s793_s13 = smov %s795_s15 }
 0x119   :  { %12 = sbr.rel (!%p10_p6) target bundleno = 2 (0x2), region = 69 }

// kernel: connected_conv2d_block_forward.5
= control target key start
LH: loop header
LB: loop body
LE: loop exit
PB: predicated region body
PF: predicated region fallthrough
CT: control target
= control target key end

     0   :  { %v533_v52 = vmov 0.0   ;;  %s668_s1 = inlined_call_operand.vmem [shape: bf16[512,128], index: 1, kind: input, shape index: {}]   ;;  %s669_s0 = inlined_call_operand.vmem [shape: bf16[6,512], index: 0, kind: input, shape index: {}]   ;;  %s670_s2 = inlined_call_operand.vmem [shape: f32[1,128], index: 2, kind: input, shape index: {}]   ;;  %s671_s3 = inlined_call_operand.vmem [shape: f32[6,128], index: 3, kind: output, shape index: {}]  }
   0x1   :  { %v497_v0 = vld [vmem:[%s668_s1 + $0x40] sm:$0xff]   ;;  %v501_v4 = vld [vmem:[%s668_s1 + $0x48] sm:$0xff]   ;;  %v505_v8 = vld [vmem:[%s668_s1 + $0x50] sm:$0xff]  }
   0x2   :  { %v498_v1 = vld [vmem:[%s668_s1 + $0xc0] sm:$0xff]   ;;  %452 = vmatprep.subr.bf16.mxu0 %v497_v0  ;;  %v502_v5 = vld [vmem:[%s668_s1 + $0xc8] sm:$0xff]   ;;  %v506_v9 = vld [vmem:[%s668_s1 + $0xd0] sm:$0xff]  }
   0x3   :  { %v499_v2 = vld [vmem:[%s668_s1] sm:$0xff]   ;;  %474 = vmatprep.subr.bf16.mxu1 %v498_v1  ;;  %v503_v6 = vld [vmem:[%s668_s1 + $0x8] sm:$0xff]   ;;  %v507_v10 = vld [vmem:[%s668_s1 + $0x10] sm:$0xff]  }
   0x4   :  { %v500_v3 = vld [vmem:[%s668_s1 + $0x80] sm:$0xff]   ;;  %453 = vmatpush3.bf16.msra.mxu0 %v499_v2  ;;  %v504_v7 = vld [vmem:[%s668_s1 + $0x88] sm:$0xff]   ;;  %v508_v11 = vld [vmem:[%s668_s1 + $0x90] sm:$0xff]  }
   0x5   :  { %475 = vmatpush3.bf16.msra.mxu1 %v500_v3  ;;  %454 = vmatprep.subr.bf16.mxu0 %v501_v4  ;;  %v509_v12 = vld [vmem:[%s668_s1 + $0x58] sm:$0xff]   ;;  %v513_v16 = vld [vmem:[%s668_s1 + $0x60] sm:$0xff]   ;;  %v517_v20 = vld [vmem:[%s668_s1 + $0x68] sm:$0xff]  }
   0x6   :  { %476 = vmatprep.subr.bf16.mxu1 %v502_v5  ;;  %v510_v13 = vld [vmem:[%s668_s1 + $0xd8] sm:$0xff]   ;;  %v514_v17 = vld [vmem:[%s668_s1 + $0xe0] sm:$0xff]   ;;  %v518_v21 = vld [vmem:[%s668_s1 + $0xe8] sm:$0xff]  }
   0x7   :  { %v511_v14 = vld [vmem:[%s668_s1 + $0x18] sm:$0xff]   ;;  %v515_v18 = vld [vmem:[%s668_s1 + $0x20] sm:$0xff]   ;;  %v519_v22 = vld [vmem:[%s668_s1 + $0x28] sm:$0xff]  }
   0x8   :  { %455 = vmatpush3.bf16.msra.mxu0 %v503_v6  ;;  %v512_v15 = vld [vmem:[%s668_s1 + $0x98] sm:$0xff]   ;;  %v516_v19 = vld [vmem:[%s668_s1 + $0xa0] sm:$0xff]   ;;  %v520_v23 = vld [vmem:[%s668_s1 + $0xa8] sm:$0xff]  }
   0x9   :  { %477 = vmatpush3.bf16.msra.mxu1 %v504_v7  ;;  %456 = vmatprep.subr.bf16.mxu0 %v505_v8  ;;  %v521_v24 = vld [vmem:[%s668_s1 + $0x70] sm:$0xff]   ;;  %v525_v28 = vld [vmem:[%s668_s1 + $0x78] sm:$0xff]   ;;  %v15_v32 = vld [vmem:[%s669_s0] sm:$0x77] }
   0xa   :  { %478 = vmatprep.subr.bf16.mxu1 %v506_v9  ;;  %v522_v25 = vld [vmem:[%s668_s1 + $0xf0] sm:$0xff]   ;;  %v526_v29 = vld [vmem:[%s668_s1 + $0xf8] sm:$0xff]   ;;  %v16_v33 = vld [vmem:[%s669_s0 + $0x8] sm:$0x77]  ;;  %v413_v34 = vcombine.low %v15_v32, %v15_v32  ;;  %v414_v35 = vcombine.high %v15_v32, %v15_v32 }
   0xb   :  { %v523_v26 = vld [vmem:[%s668_s1 + $0x30] sm:$0xff]   ;;  %v527_v30 = vld [vmem:[%s668_s1 + $0x38] sm:$0xff]   ;;  %v415_v36 = vcombine.low %v16_v33, %v16_v33  ;;  %v416_v37 = vcombine.high %v16_v33, %v16_v33  ;;  %v412_v40 = vld [vmem:[%s670_s2] ss:$0 sm:$0xff] }
   0xc   :  { %457 = vmatpush3.bf16.msra.mxu0 %v507_v10  ;;  %v524_v27 = vld [vmem:[%s668_s1 + $0xb0] sm:$0xff]   ;;  %v528_v31 = vld [vmem:[%s668_s1 + $0xb8] sm:$0xff]   ;;  %326 = vmatprep.mubr.bf16.mxu0 %v414_v35 }
   0xd   :  { %479 = vmatpush3.bf16.msra.mxu1 %v508_v11  ;;  %458 = vmatprep.subr.bf16.mxu0 %v509_v12 }
   0xe   :  { %480 = vmatprep.subr.bf16.mxu1 %v510_v13  ;;  %366 = vmatprep.mubr.bf16.mxu1 %v416_v37 }
  0x10   :  { %459 = vmatpush3.bf16.msra.mxu0 %v511_v14 }
  0x11   :  { %481 = vmatpush3.bf16.msra.mxu1 %v512_v15  ;;  %460 = vmatprep.subr.bf16.mxu0 %v513_v16 }
  0x12   :  { %482 = vmatprep.subr.bf16.mxu1 %v514_v17 }
  0x14   :  { %461 = vmatpush3.bf16.msra.mxu0 %v515_v18 }
  0x15   :  { %483 = vmatpush3.bf16.msra.mxu1 %v516_v19  ;;  %462 = vmatprep.subr.bf16.mxu0 %v517_v20 }
  0x16   :  { %484 = vmatprep.subr.bf16.mxu1 %v518_v21 }
  0x18   :  { %463 = vmatpush3.bf16.msra.mxu0 %v519_v22 }
  0x19   :  { %485 = vmatpush3.bf16.msra.mxu1 %v520_v23  ;;  %464 = vmatprep.subr.bf16.mxu0 %v521_v24 }
  0x1a   :  { %486 = vmatprep.subr.bf16.mxu1 %v522_v25 }
  0x1c   :  { %465 = vmatpush3.bf16.msra.mxu0 %v523_v26 }
  0x1d   :  { %487 = vmatpush3.bf16.msra.mxu1 %v524_v27  ;;  %466 = vmatprep.subr.bf16.mxu0 %v525_v28 }
  0x1e   :  { %488 = vmatprep.subr.bf16.mxu1 %v526_v29 }
  0x20   :  { %467 = vmatpush3.bf16.msra.mxu0 %v527_v30 }
  0x21   :  { %489 = vmatpush3.bf16.msra.mxu1 %v528_v31 }
  0x23   :  { %327 = vmatmul.mubr.bf16.vlgmr.msra.gmra.mrb[0].mxu0 %v413_v34 }
  0x24   :  { %367 = vmatmul.mubr.bf16.vlgmr.msra.gmra.mrb[0].mxu1 %v415_v36 }
  0xf6   :  { %v468_v38 = vpop.f32.mrb[0].mxu0 }
  0xf7   :  { %v490_v39 = vpop.f32.mrb[0].mxu1  ;;  %v469_v41 = vpop.f32.mrb[1].mxu0 }
  0xf8   :  { %v491_v42 = vpop.f32.mrb[1].mxu1  ;;  %v470_v43 = vadd.f32 %v469_v41, %v468_v38  ;;  %v471_v45 = vpop.f32.mrb[2].mxu0 }
  0xf9   :  { %v492_v44 = vadd.f32 %v491_v42, %v490_v39  ;;  %v493_v46 = vpop.f32.mrb[2].mxu1  ;;  %v472_v47 = vpop.f32.mrb[3].mxu0 }
  0xfa   :  { %v494_v48 = vpop.f32.mrb[3].mxu1  ;;  %v329_v49 = vadd.f32 %v470_v43, %v412_v40 }
  0xfc   :  { %v369_v50 = vadd.f32 %v492_v44, %v329_v49 }
  0xfe   :  { %v374_v51 = vmul.f32 0.5, %v369_v50 }
 0x100   :  { %vm376_vm0 = vcmp.ge.f32.partialorder %v374_v51, 1.0 }
 0x101   :  { %v449_v53 = vsel %vm376_vm0, 1.0, %v533_v52  ;;  %v380_v54 = vsel %vm376_vm0, 0.0, %v374_v51 }
 0x102   :  { %379 = vst [vmem:[%s671_s3] sm:$0x3] %v449_v53  ;;  %v382_v55 = vrot.slane %v380_v54, 6 }
 0x104   :  { %v384_v56 = vsub.f32 %v369_v50, %v382_v55 }
 0x106   :  { %v385_v57 = vmul.f32 0.5, %v384_v56 }
 0x108   :  { %v387_v58 = vrot.slane %v385_v57, 2 }
 0x10a   :  { %v389_v59 = vadd.f32 %v387_v58, %v380_v54 }
 0x10c   :  { %vm390_vm1 = vcmp.ge.f32.partialorder %v389_v59, 1.0 }
 0x10d   :  { %v450_v60 = vsel %vm390_vm1, 1.0, %v533_v52  ;;  %v394_v61 = vsel %vm390_vm1, 0.0, %v389_v59 }
 0x10e   :  { %393 = vst [vmem:[%s671_s3 + $0x2] sm:$0x3] %v450_v60  ;;  %v396_v62 = vrot.slane %v394_v61, 4 }
 0x110   :  { %v398_v63 = vsub.f32 %v369_v50, %v396_v62 }
 0x112   :  { %v399_v0 = vmul.f32 0.5, %v398_v63 }
 0x114   :  { %v401_v1 = vrot.slane %v399_v0, 4 }
 0x116   :  { %v403_v2 = vadd.f32 %v401_v1, %v394_v61 }
 0x118   :  { %vm404_vm2 = vcmp.ge.f32.partialorder %v403_v2, 1.0 }
 0x119   :  { %v451_v3 = vsel %vm404_vm2, 1.0, %v533_v52 }
 0x11a   :  { %407 = vst [vmem:[%s671_s3 + $0x4] sm:$0x3] %v451_v3 }

</bundles_post_ra>
